<compile_context>
chip_gen: v7x
topology: tpu7x:2x2x1
jax: 0.10.0
libtpu: 0.0.40
codegen_flags: <defaults>
</compile_context>

<pallas_src>
import jax
import jax.numpy as jnp
from jax.experimental import pallas as pl
from jax.experimental.pallas import tpu as pltpu


def _transition_kernel(xp_ref, w_ref, o_ref):
    # xp_ref block: (1, 4*Cin, tile_n) -- four phase groups stacked along channels.
    # 1x1 conv == channel matmul per spatial column (per pooling phase);
    # 2x2 max-pool == running elementwise max across the four phases.
    w = w_ref[...]                       # (Cout, Cin), resident across the grid
    xp = xp_ref[0]                       # (4*Cin, tile_n), lane-dense spatial
    cin = w.shape[1]
    acc = jnp.dot(w, xp[0:cin], preferred_element_type=jnp.float32)       # (Cout, tile_n)
    for g in range(1, 4):
        xg = xp[g * cin:(g + 1) * cin]
        acc = jnp.maximum(acc, jnp.dot(w, xg, preferred_element_type=jnp.float32))
    o_ref[0] = acc.astype(o_ref.dtype)


def _round_up(x, m):
    return (x + m - 1) // m * m


def _choose_tile_n(N, Cin, Cout, in_bytes, out_bytes, B,
                   budget_bytes=20 * 1024 * 1024, cap=65536):
    """Largest 128-aligned spatial tile whose double-buffered in+out blocks fit the budget."""
    rows_in = _round_up(4 * Cin, 8)        # packed phase rows (sublane-padded)
    rows_out = _round_up(Cout, 8)
    per_col = 2 * (rows_in * in_bytes + rows_out * out_bytes)   # x2 = double buffering
    max_cols = max(128, budget_bytes // max(per_col, 1) // 128 * 128)
    tile = min(max_cols, cap, _round_up(N, 128))
    # Keep B * n_tiles >= 4 so the ("parallel","parallel") grid can load both v7x TCs.
    while tile > 512 and B * ((N + tile - 1) // tile) < 4:
        tile = max(512, _round_up((tile + 1) // 2, 128))
    return tile


def transition_forward(x_nchw, conv_weight, *, tile_n=None, cast_to_bf16=False):
    """x_nchw: (B, Cin, H, W); conv_weight: (Cout, Cin) or (Cout, Cin, 1, 1).
    Returns (B, Cout, H//2, W//2), matching Conv2d(1x1, bias=False) + max_pool2d((2,2),(2,2))."""
    B, Cin, H, W = x_nchw.shape
    w = conv_weight.reshape(conv_weight.shape[0], Cin)
    Cout = w.shape[0]
    assert H % 2 == 0 and W % 2 == 0
    Hh, Wh = H // 2, W // 2
    N = Hh * Wh

    out_dtype = x_nchw.dtype
    if cast_to_bf16:
        # Optional (best on v5e, HBM-bound): halves input bytes; kernel still accumulates f32.
        x_nchw = x_nchw.astype(jnp.bfloat16)
    w = w.astype(x_nchw.dtype)

    in_bytes = jnp.dtype(x_nchw.dtype).itemsize
    out_bytes = jnp.dtype(out_dtype).itemsize
    if tile_n is None:
        tile_n = _choose_tile_n(N, Cin, Cout, in_bytes, out_bytes, B)

    # Always pad spatial to a multiple of tile_n (itself a multiple of 128) so output
    # stores are unmasked / lane-dense; padded zero columns are sliced off afterwards.
    N_pad = pl.cdiv(N, tile_n) * tile_n

    # ---- host glue: pack the four pool phases into ONE (B, 4*Cin, N) array in a single
    # fused XLA pass. Group g = 2*ph + pw occupies rows [g*Cin, (g+1)*Cin). ----
    x6 = x_nchw.reshape(B, Cin, Hh, 2, Wh, 2)
    xp = jnp.transpose(x6, (0, 3, 5, 1, 2, 4)).reshape(B, 4 * Cin, N)
    if N_pad != N:
        xp = jnp.pad(xp, ((0, 0), (0, 0), (0, N_pad - N)))

    n_tiles = N_pad // tile_n
    grid = (B, n_tiles)

    x_spec = pl.BlockSpec((1, 4 * Cin, tile_n), lambda b, j: (b, 0, j))
    w_spec = pl.BlockSpec((Cout, Cin), lambda b, j: (0, 0))
    o_spec = pl.BlockSpec((1, Cout, tile_n), lambda b, j: (b, 0, j))

    out = pl.pallas_call(
        _transition_kernel,
        out_shape=jax.ShapeDtypeStruct((B, Cout, N_pad), out_dtype),
        grid_spec=pltpu.PrefetchScalarGridSpec(
            num_scalar_prefetch=0,
            grid=grid,
            in_specs=[x_spec, w_spec],
            out_specs=o_spec,
        ),
        compiler_params=pltpu.CompilerParams(
            dimension_semantics=("parallel", "parallel"),
            vmem_limit_bytes=32 * 1024 * 1024,
        ),
    )(xp, w)

    if N_pad != N:
        out = out[:, :, :N]
    # Free reshape: (B, Cout, N) -> (B, Cout, Hh, Wh); output is already NCHW.
    return out.reshape(B, Cout, Hh, Wh)


def _reference(x_nchw, conv_weight):
    # pure-JAX reference: 1x1 conv (no bias) + 2x2 max-pool stride 2
    y = jnp.einsum('bchw,oc->bohw', x_nchw, conv_weight)
    B, Co, H, W = y.shape
    y = y.reshape(B, Co, H // 2, 2, W // 2, 2)
    return jnp.max(jnp.max(y, axis=5), axis=3)


if __name__ == "__main__":
    key = jax.random.PRNGKey(0)
    kx, kw = jax.random.split(key)

    # small shapes consistent with the module's forward
    B, Cin, H, W = 2, 4, 16, 16
    Cout = 8

    x = jax.random.normal(kx, (B, Cin, H, W), dtype=jnp.float32)

    # deterministic Conv2d(Cin, Cout, kernel_size=1, bias=False) weight,
    # same uniform(-1/sqrt(fan_in), 1/sqrt(fan_in)) scheme as PyTorch default.
    fan_in = Cin * 1 * 1
    bound = 1.0 / (fan_in ** 0.5)
    w = jax.random.uniform(kw, (Cout, Cin), dtype=jnp.float32,
                           minval=-bound, maxval=bound)

    fwd = jax.jit(transition_forward)
    out = jax.block_until_ready(fwd(x, w))

    ref = _reference(x, w)
    assert out.shape == (B, Cout, H // 2, W // 2), out.shape
    assert jnp.allclose(out, ref, atol=1e-5, rtol=1e-5), \
        float(jnp.max(jnp.abs(out - ref)))
    print("KERNEL_OK")
</pallas_src>

<mosaic_0001>
module attributes {stable_mosaic.version = 11 : i64} {
  func.func @_transition_kernel(%arg0: i32, %arg1: i32, %arg2: memref<1x16x128xf32, #tpu.memory_space<vmem>>, %arg3: memref<8x4xf32, #tpu.memory_space<vmem>>, %arg4: memref<1x8x128xf32, #tpu.memory_space<vmem>>) attributes {dimension_semantics = [#tpu.dimension_semantics<parallel>, #tpu.dimension_semantics<parallel>], iteration_bounds = array<i64: 2, 1>, scalar_prefetch = 0 : i64, scratch_operands = 0 : i64, tpu.core_type = #tpu.core_type<tc>, window_params = [{transform_indices = @transform_0, window_bounds = array<i64: 1, 16, 128>}, {pipeline_mode = #tpu.pipeline_mode<synchronous>, transform_indices = @transform_1, window_bounds = array<i64: 8, 4>}, {transform_indices = @transform_2, window_bounds = array<i64: 1, 8, 128>}]} {
    %c0 = arith.constant 0 : index
    %c0_0 = arith.constant 0 : index
    %0 = vector.load %arg3[%c0, %c0_0] : memref<8x4xf32, #tpu.memory_space<vmem>>, vector<8x4xf32>
    %c0_1 = arith.constant 0 : index
    %c0_2 = arith.constant 0 : index
    %c0_3 = arith.constant 0 : index
    %1 = vector.load %arg2[%c0_1, %c0_2, %c0_3] : memref<1x16x128xf32, #tpu.memory_space<vmem>>, vector<1x16x128xf32>
    %2 = vector.shape_cast %1 : vector<1x16x128xf32> to vector<16x128xf32>
    %3 = vector.extract_strided_slice %2 {offsets = [0, 0], sizes = [4, 128], strides = [1, 1]} : vector<16x128xf32> to vector<4x128xf32>
    %cst = arith.constant dense<0.000000e+00> : vector<8x128xf32>
    %4 = tpu.matmul %0, %3, %cst {dimension_numbers = #tpu.dot_dimension_numbers<[1], [0], [0], [1], [0, 0, 1, 1], [], []>} : vector<8x4xf32>, vector<4x128xf32>, vector<8x128xf32> -> vector<8x128xf32>
    %5 = vector.extract_strided_slice %2 {offsets = [4, 0], sizes = [4, 128], strides = [1, 1]} : vector<16x128xf32> to vector<4x128xf32>
    %cst_4 = arith.constant dense<0.000000e+00> : vector<8x128xf32>
    %6 = tpu.matmul %0, %5, %cst_4 {dimension_numbers = #tpu.dot_dimension_numbers<[1], [0], [0], [1], [0, 0, 1, 1], [], []>} : vector<8x4xf32>, vector<4x128xf32>, vector<8x128xf32> -> vector<8x128xf32>
    %7 = arith.maximumf %4, %6 : vector<8x128xf32>
    %8 = vector.extract_strided_slice %2 {offsets = [8, 0], sizes = [4, 128], strides = [1, 1]} : vector<16x128xf32> to vector<4x128xf32>
    %cst_5 = arith.constant dense<0.000000e+00> : vector<8x128xf32>
    %9 = tpu.matmul %0, %8, %cst_5 {dimension_numbers = #tpu.dot_dimension_numbers<[1], [0], [0], [1], [0, 0, 1, 1], [], []>} : vector<8x4xf32>, vector<4x128xf32>, vector<8x128xf32> -> vector<8x128xf32>
    %10 = arith.maximumf %7, %9 : vector<8x128xf32>
    %11 = vector.extract_strided_slice %2 {offsets = [12, 0], sizes = [4, 128], strides = [1, 1]} : vector<16x128xf32> to vector<4x128xf32>
    %cst_6 = arith.constant dense<0.000000e+00> : vector<8x128xf32>
    %12 = tpu.matmul %0, %11, %cst_6 {dimension_numbers = #tpu.dot_dimension_numbers<[1], [0], [0], [1], [0, 0, 1, 1], [], []>} : vector<8x4xf32>, vector<4x128xf32>, vector<8x128xf32> -> vector<8x128xf32>
    %13 = arith.maximumf %10, %12 : vector<8x128xf32>
    %c0_7 = arith.constant 0 : index
    %c0_8 = arith.constant 0 : index
    %c0_9 = arith.constant 0 : index
    %14 = vector.load %arg4[%c0_7, %c0_8, %c0_9] : memref<1x8x128xf32, #tpu.memory_space<vmem>>, vector<1x8x128xf32>
    %15 = vector.shape_cast %14 : vector<1x8x128xf32> to vector<8x128xf32>
    %16 = vector.shape_cast %13 : vector<8x128xf32> to vector<1x8x128xf32>
    tpu.vector_store %arg4[%c0_7, %c0_8, %c0_9], %16 {strides = array<i32>} : memref<1x8x128xf32, #tpu.memory_space<vmem>>, vector<1x8x128xf32>,
    return
  }
  func.func @transform_0(%arg0: i32, %arg1: i32) -> (i32, i32, i32) {
    %c0_i32 = arith.constant 0 : i32
    %c0_i32_0 = arith.constant 0 : i32
    return %arg0, %c0_i32, %arg1 : i32, i32, i32
  }
  func.func @transform_1(%arg0: i32, %arg1: i32) -> (i32, i32) {
    %c0_i32 = arith.constant 0 : i32
    %c0_i32_0 = arith.constant 0 : i32
    %c0_i32_1 = arith.constant 0 : i32
    return %c0_i32, %c0_i32_0 : i32, i32
  }
  func.func @transform_2(%arg0: i32, %arg1: i32) -> (i32, i32, i32) {
    %c0_i32 = arith.constant 0 : i32
    %c0_i32_0 = arith.constant 0 : i32
    return %arg0, %c0_i32, %arg1 : i32, i32, i32
  }
}

</mosaic_0001>

<bundles_post_ra>
// kernel: transition_forward.1
= control target key start
LH: loop header
LB: loop body
LE: loop exit
PB: predicated region body
PF: predicated region fallthrough
CT: control target
= control target key end

     0   :  { %s668_s9 = smov 0   ;;  %s670_s10 = smov 0   ;;  %s720_s0 = inlined_call_operand.vmem [shape: f32[2,16,128], index: 0, kind: input, shape index: {}]   ;;  %s721_s1 = inlined_call_operand.vmem [shape: f32[8,4], index: 1, kind: input, shape index: {}]   ;;  %s722_s2 = inlined_call_operand.vmem [shape: f32[2,8,128], index: 2, kind: output, shape index: {}]  }
   0x1   :  { %s672_s11 = smov 0  }
   0x2 LB: > { %s24_s12 = sadd.s32 1, %s645_s10  ;;  %p558_p0 = scmp.ge.s32.totalorder %s649_s11, 1  ;;  %s649_s11 = sphi %s672_s11, %s12_s11   ;;  %s645_s10 = sphi %s670_s10, %s724_s10   ;;  %s641_s9 = sphi %s668_s9, %s723_s9  }
   0x3   : > { %p26_p1 = scmp.ge.s32.totalorder %s24_s12, 2  ;;  %p131_p2 = scmp.lt.s32.totalorder %s649_s11, 3 }
   0x5   : > { %s726_s12 = smov (%p26_p1, %s24_s12), 0  ;;  %p132_p3 = pnand %p558_p0, %p131_p2 }
   0x6   : > { %p158_p4 = scmp.lt.s32.totalorder (!%p132_p3), %s641_s9, 1  ;;  %v651_v0 = vmov (!%p132_p3), 0.0   ;;  %vm652_vm0 = vmmov (!%p132_p3), 0   ;;  %vm180_vm1 = vcmask (!%p132_p3), 1043456   ;;  %v173_v1 = vld [vmem:[%s721_s1] sm:$0xff] (!%p132_p3)  ;;  %vm176_vm2 = vcmask (!%p132_p3), 31744  }
   0x7   : > { %135 = sbr.rel (%p132_p3) target bundleno = 240 (0xf0), region = 28  ;;  %581 = vmatprep.subr.mxu0 (!%p132_p3), %v651_v0  ;;  %583 = vmatprep.mubr.msk.f32.mxu0 (!%p132_p3), %vm652_vm0, %v651_v0 }
   0x8   : > { %586 = vmatprep.subr.mxu1 (!%p132_p3), %v651_v0  ;;  %588 = vmatprep.mubr.msk.f32.mxu1 (!%p132_p3), %vm652_vm0, %v651_v0 }
   0xe   : > { %s728_s9 = smov (!%p158_p4, %s641_s9), 1 }
   0xf   : > { %s572_s13 = sshll.u32 %s728_s9, 4  ;;  %s561_s19 = sshll.u32 %s728_s9, 3 }
  0x10   : > { %s165_s16 = scalar_lea.vmem %s720_s0, %s572_s13  ;;  %s172_s22 = scalar_lea.vmem %s722_s2, %s561_s19 }
  0x11   : > { %v174_v2 = vld [vmem:[%s165_s16] sm:$0xff]  ;;  %v175_v3 = vld [vmem:[%s165_s16 + $0x8] sm:$0xff] }
  0x12   : > { %582 = vmatpush3.msk.msra.mxu0 %vm180_vm1, %v174_v2  ;;  %v254_v4 = vrot.slane %v174_v2, 4  ;;  %v402_v5 = vrot.slane %v175_v3, 4 }
  0x13   : > { %584 = vmatmul.mubr.msk.f32.vlgmr.msra.gmra.mrb[0].mxu0 %vm176_vm2, %v173_v1  ;;  %591 = vmatprep.subr.mxu0 %v651_v0 }
  0x14   : > { %587 = vmatpush3.msk.msra.mxu1 %vm180_vm1, %v254_v4  ;;  %592 = vmatpush3.msk.msra.mxu0 %vm180_vm1, %v175_v3 }
  0x15   : > { %589 = vmatmul.mubr.msk.f32.vlgmr.msra.gmra.mrb[0].mxu1 %vm176_vm2, %v173_v1  ;;  %596 = vmatprep.subr.mxu1 %v651_v0 }
  0x16   : > { %593 = vmatprep.mubr.msk.f32.mxu0 %vm652_vm0, %v651_v0  ;;  %597 = vmatpush3.msk.msra.mxu1 %vm180_vm1, %v402_v5 }
  0x17   : > { %594 = vmatmul.mubr.msk.f32.vlgmr.msra.gmra.mrb[2].mxu0 %vm176_vm2, %v173_v1  ;;  %598 = vmatprep.mubr.msk.f32.mxu1 %vm652_vm0, %v651_v0 }
  0x19   : > { %599 = vmatmul.mubr.msk.f32.vlgmr.msra.gmra.mrb[2].mxu1 %vm176_vm2, %v173_v1 }
  0xe6   : > { %v250_v6 = vpop.f32.mrb[0].mxu0 }
  0xe7   : > { %v585_v7 = vpop.f32.mrb[1].mxu0 }
  0xe8   : > { %v323_v8 = vpop.f32.mrb[0].mxu1 }
  0xe9   : > { %v327_v9 = vmax.f32 %v250_v6, %v323_v8  ;;  %v590_v10 = vpop.f32.mrb[1].mxu1 }
  0xea   : > { %v397_v11 = vpop.f32.mrb[2].mxu0 }
  0xeb   : > { %v401_v12 = vmax.f32 %v327_v9, %v397_v11  ;;  %v595_v13 = vpop.f32.mrb[3].mxu0 }
  0xec   : > { %v471_v14 = vpop.f32.mrb[2].mxu1 }
  0xed   : > { %v475_v15 = vmax.f32 %v401_v12, %v471_v14  ;;  %v600_v16 = vpop.f32.mrb[3].mxu1 }
  0xef   : > { %476 = vst [vmem:[%s172_s22] sm:$0xff] %v475_v15 }
  0xf0 PF: > { %s12_s11 = sadd.s32 1, %s649_s11   ;;  %s723_s9 = smov %s645_s10 }
  0xf1   : > { %p9_p5 = scmp.ge.s32.totalorder %s12_s11, 4   ;;  %s724_s10 = smov %s726_s12 }
  0xf3   :  { %11 = sbr.rel (!%p9_p5) target bundleno = 2 (0x2), region = 58 }

</bundles_post_ra>
